<compile_context>
chip_gen: v7x
topology: tpu7x:2x2x1
jax: 0.10.0
libtpu: 0.0.40
codegen_flags: <defaults>
</compile_context>

<pallas_src>
import math

import jax
import jax.numpy as jnp
from jax.experimental import pallas as pl
from jax.experimental.pallas import tpu as pltpu


def mha_kernel(q_ref, k_ref, v_ref,
               wq_ref, bq_ref, wk_ref, bk_ref, wv_ref, bv_ref,
               wo_ref, bo_ref, o_ref, acc_ref):
    """Grid: (batch_blocks [parallel], heads [arbitrary, accumulated])."""
    Bt, S, H = q_ref.shape
    d_k = wq_ref.shape[2]
    mxu_dtype = q_ref.dtype          # MXU input dtype (bf16 by default, or f32)
    h = pl.program_id(1)

    @pl.when(h == 0)
    def _():
        acc_ref[...] = jnp.zeros_like(acc_ref)

    # ---- Per-head Q/K/V projections -----------------------------------------
    # Weights arrive pre-transposed and pre-sliced per head: (H, d_k) blocks,
    # so each MXU call contracts the full hidden axis with no in-kernel
    # transpose or dynamic lane slicing.  1/sqrt(d_k) is folded into wq/bq.
    # f32 accumulation; bias adds in f32.
    # TODO(synk): when S is not a multiple of the sublane pack (8 f32 / 16 bf16)
    # this reshape materializes a VMEM copy; pad S in the wrapper for such shapes.
    q2 = q_ref[...].reshape(Bt * S, H)
    k2 = k_ref[...].reshape(Bt * S, H)
    v2 = v_ref[...].reshape(Bt * S, H)

    qh = (jnp.dot(q2, wq_ref[0], preferred_element_type=jnp.float32)
          + bq_ref[0]).astype(mxu_dtype).reshape(Bt, S, d_k)
    kh = (jnp.dot(k2, wk_ref[0], preferred_element_type=jnp.float32)
          + bk_ref[0]).astype(mxu_dtype).reshape(Bt, S, d_k)
    vh = (jnp.dot(v2, wv_ref[0], preferred_element_type=jnp.float32)
          + bv_ref[0]).astype(mxu_dtype).reshape(Bt, S, d_k)

    # ---- Scaled-dot-product attention for this head (softmax math in f32) ---
    # TODO(synk): attention mask support omitted (mask=None path only).
    # TODO(synk): for long S, tile the KV axis with an online-softmax (flash)
    # grid axis instead of materializing the full (Bt,S,S) score tensor.
    s = jnp.einsum("bqd,bkd->bqk", qh, kh,
                   preferred_element_type=jnp.float32)          # (Bt, S, S)
    s = s - jnp.max(s, axis=-1, keepdims=True)
    p = jnp.exp(s)
    denom = jnp.sum(p, axis=-1, keepdims=True)                  # (Bt, S, 1)
    # TODO(synk): dropout on attention probabilities omitted (eval-mode identity).

    ho = jnp.einsum("bqk,bkd->bqd", p.astype(mxu_dtype), vh,
                    preferred_element_type=jnp.float32)         # (Bt, S, d_k)
    # Normalize AFTER the PV matmul: O(Bt*S*d_k) VPU work instead of O(Bt*S*S).
    # (approx reciprocal -> softmax rows sum to 1 only to a few ulps.)
    ho = ho * pl.reciprocal(denom, approx=True)

    # ---- Fused output projection (accumulated across the head grid axis) ----
    ho2 = ho.astype(mxu_dtype).reshape(Bt * S, d_k)
    acc_ref[...] += jnp.dot(ho2, wo_ref[0],
                            preferred_element_type=jnp.float32).reshape(Bt, S, H)

    @pl.when(h == pl.num_programs(1) - 1)
    def _():
        o_ref[...] = (acc_ref[...] + bo_ref[...]).astype(o_ref.dtype)


def multi_headed_attention(q, k, v, params, num_heads, *,
                           compute_dtype=jnp.bfloat16, batch_block=None):
    """q, k, v: (B, S, H). params: PyTorch nn.Linear layout W (out,in), b (1,H)."""
    B, S, H = q.shape
    assert H % num_heads == 0
    d_k = H // num_heads
    out_dtype = q.dtype
    cdt = jnp.dtype(compute_dtype)
    scale = 1.0 / math.sqrt(d_k)

    # One-time parameter prep (outside the kernel):
    #   * transpose W to (in, out) so the kernel matmuls need no .T,
    #   * fold the 1/sqrt(d_k) attention scale into the Q projection,
    #   * lay weights out head-major so BlockSpec hands each head its slice
    #     (no dynamic lane slicing, no (H,H) weight blocks resident in VMEM),
    #   * cast MXU inputs to the compute dtype; biases stay f32 for exact adds.
    wq_h = (params["wq"].T * scale).reshape(H, num_heads, d_k).transpose(1, 0, 2).astype(cdt)
    wk_h = params["wk"].T.reshape(H, num_heads, d_k).transpose(1, 0, 2).astype(cdt)
    wv_h = params["wv"].T.reshape(H, num_heads, d_k).transpose(1, 0, 2).astype(cdt)
    wo_h = params["wo"].T.reshape(num_heads, d_k, H).astype(cdt)      # rows lo:hi per head
    bq_h = (params["bq"] * scale).reshape(num_heads, 1, d_k).astype(jnp.float32)
    bk_h = params["bk"].reshape(num_heads, 1, d_k).astype(jnp.float32)
    bv_h = params["bv"].reshape(num_heads, 1, d_k).astype(jnp.float32)
    bo = params["bo"].reshape(1, H).astype(jnp.float32)

    qc = q.astype(cdt)
    kc = k.astype(cdt)
    vc = v.astype(cdt)
    act_itemsize = cdt.itemsize

    def step_vmem_bytes(bt):
        rows = bt * S
        return (4 * 2 * rows * H * act_itemsize          # q/k/v/o slabs, double-buffered
                + rows * H * 4                           # f32 accumulator scratch
                + 2 * bt * S * S * 4                     # one head's f32 scores + exp temps
                + 2 * 2 * 4 * H * d_k * act_itemsize)    # per-head weight slices, 2 buffers

    if batch_block is None:
        # Size the batch block against a VMEM budget (conservative across
        # v5e/v6e/v7x), target >=512 rows per step when the budget allows, and
        # keep >=2 steps on the batch-parallel axis so v7x's 2 TCs both work.
        vmem_budget = 48 * 1024 * 1024
        divisors = [t for t in range(1, B + 1) if B % t == 0]
        fitting = [t for t in divisors if step_vmem_bytes(t) <= vmem_budget] or [1]
        pool = [t for t in fitting if B // t >= 2] or fitting
        big_enough = [t for t in pool if t * S >= 512]
        Bt = min(big_enough) if big_enough else max(pool)
    else:
        Bt = batch_block
    assert B % Bt == 0

    vmem_limit = int(min(96 * 1024 * 1024,
                         max(32 * 1024 * 1024, 2 * step_vmem_bytes(Bt))))

    x_spec = pl.BlockSpec((Bt, S, H), lambda b, h: (b, 0, 0))
    wqkv_spec = pl.BlockSpec((1, H, d_k), lambda b, h: (h, 0, 0))
    bqkv_spec = pl.BlockSpec((1, 1, d_k), lambda b, h: (h, 0, 0))
    wo_spec = pl.BlockSpec((1, d_k, H), lambda b, h: (h, 0, 0))
    bo_spec = pl.BlockSpec((1, H), lambda b, h: (0, 0))

    return pl.pallas_call(
        mha_kernel,
        out_shape=jax.ShapeDtypeStruct((B, S, H), out_dtype),
        grid=(B // Bt, num_heads),
        in_specs=[x_spec, x_spec, x_spec,
                  wqkv_spec, bqkv_spec, wqkv_spec, bqkv_spec, wqkv_spec, bqkv_spec,
                  wo_spec, bo_spec],
        out_specs=x_spec,
        scratch_shapes=[pltpu.VMEM((Bt, S, H), jnp.float32)],
        compiler_params=pltpu.CompilerParams(
            dimension_semantics=("parallel", "arbitrary"),
            vmem_limit_bytes=vmem_limit),
    )(qc, kc, vc, wq_h, bq_h, wk_h, bk_h, wv_h, bv_h, wo_h, bo)


def _reference(q, k, v, params, num_heads):
    """Pure-JAX reference mirroring the PyTorch forward (mask=None, eval mode)."""
    B, S, H = q.shape
    d_k = H // num_heads

    def lin(x, w, b):
        return x @ w.T + b[0]

    qp = lin(q, params["wq"], params["bq"]).reshape(B, S, num_heads, d_k).transpose(0, 2, 1, 3)
    kp = lin(k, params["wk"], params["bk"]).reshape(B, S, num_heads, d_k).transpose(0, 2, 1, 3)
    vp = lin(v, params["wv"], params["bv"]).reshape(B, S, num_heads, d_k).transpose(0, 2, 1, 3)

    scores = jnp.einsum("bhqd,bhkd->bhqk", qp, kp) / math.sqrt(d_k)
    scores = jax.nn.softmax(scores, axis=-1)
    out = jnp.einsum("bhqk,bhkd->bhqd", scores, vp)
    out = out.transpose(0, 2, 1, 3).reshape(B, S, H)
    return lin(out, params["wo"], params["bo"])


if __name__ == "__main__":
    B, S, H = 2, 8, 32
    num_heads = 4

    key = jax.random.PRNGKey(0)
    keys = jax.random.split(key, 12)

    # Deterministic synthetic parameters (PyTorch Linear layout: (out, in)).
    pscale = 0.05
    params = {
        "wq": pscale * jax.random.normal(keys[0], (H, H), jnp.float32),
        "bq": pscale * jax.random.normal(keys[1], (1, H), jnp.float32),
        "wk": pscale * jax.random.normal(keys[2], (H, H), jnp.float32),
        "bk": pscale * jax.random.normal(keys[3], (1, H), jnp.float32),
        "wv": pscale * jax.random.normal(keys[4], (H, H), jnp.float32),
        "bv": pscale * jax.random.normal(keys[5], (1, H), jnp.float32),
        "wo": pscale * jax.random.normal(keys[6], (H, H), jnp.float32),
        "bo": pscale * jax.random.normal(keys[7], (1, H), jnp.float32),
    }

    q = jax.random.normal(keys[8], (B, S, H), jnp.float32)
    k = jax.random.normal(keys[9], (B, S, H), jnp.float32)
    v = jax.random.normal(keys[10], (B, S, H), jnp.float32)

    ref = _reference(q, k, v, params, num_heads)

    # Default path: bf16 MXU inputs, f32 accumulation + f32 softmax.
    out_bf16 = jax.block_until_ready(multi_headed_attention(q, k, v, params, num_heads))
    assert out_bf16.shape == (B, S, H)
    assert out_bf16.dtype == q.dtype
    assert jnp.allclose(out_bf16, ref, atol=5e-2, rtol=5e-2), "bf16 kernel mismatch vs reference"

    # f32 MXU-input path (approx=True softmax reciprocal costs a few ulps).
    out_f32 = jax.block_until_ready(
        multi_headed_attention(q, k, v, params, num_heads, compute_dtype=jnp.float32))
    assert jnp.allclose(out_f32, ref, atol=2e-3, rtol=2e-3), "f32 kernel mismatch vs reference"

    print("KERNEL_OK")
</pallas_src>

<mosaic_0001>
module attributes {stable_mosaic.version = 11 : i64} {
  func.func @mha_kernel(%arg0: i32, %arg1: i32, %arg2: memref<1x8x32xbf16, #tpu.memory_space<vmem>>, %arg3: memref<1x8x32xbf16, #tpu.memory_space<vmem>>, %arg4: memref<1x8x32xbf16, #tpu.memory_space<vmem>>, %arg5: memref<1x32x8xbf16, #tpu.memory_space<vmem>>, %arg6: memref<1x1x8xf32, #tpu.memory_space<vmem>>, %arg7: memref<1x32x8xbf16, #tpu.memory_space<vmem>>, %arg8: memref<1x1x8xf32, #tpu.memory_space<vmem>>, %arg9: memref<1x32x8xbf16, #tpu.memory_space<vmem>>, %arg10: memref<1x1x8xf32, #tpu.memory_space<vmem>>, %arg11: memref<1x8x32xbf16, #tpu.memory_space<vmem>>, %arg12: memref<1x32xf32, #tpu.memory_space<vmem>>, %arg13: memref<1x8x32xf32, #tpu.memory_space<vmem>>, %arg14: memref<1x8x32xf32, #tpu.memory_space<vmem>>) attributes {dimension_semantics = [#tpu.dimension_semantics<parallel>, #tpu.dimension_semantics<arbitrary>], iteration_bounds = array<i64: 2, 4>, scalar_prefetch = 0 : i64, scratch_operands = 1 : i64, tpu.core_type = #tpu.core_type<tc>, window_params = [{transform_indices = @transform_0, window_bounds = array<i64: 1, 8, 32>}, {transform_indices = @transform_1, window_bounds = array<i64: 1, 8, 32>}, {transform_indices = @transform_2, window_bounds = array<i64: 1, 8, 32>}, {transform_indices = @transform_3, window_bounds = array<i64: 1, 32, 8>}, {transform_indices = @transform_4, window_bounds = array<i64: 1, 1, 8>}, {transform_indices = @transform_5, window_bounds = array<i64: 1, 32, 8>}, {transform_indices = @transform_6, window_bounds = array<i64: 1, 1, 8>}, {transform_indices = @transform_7, window_bounds = array<i64: 1, 32, 8>}, {transform_indices = @transform_8, window_bounds = array<i64: 1, 1, 8>}, {transform_indices = @transform_9, window_bounds = array<i64: 1, 8, 32>}, {pipeline_mode = #tpu.pipeline_mode<synchronous>, transform_indices = @transform_10, window_bounds = array<i64: 1, 32>}, {transform_indices = @transform_11, window_bounds = array<i64: 1, 8, 32>}]} {
    %c0_i32 = arith.constant 0 : i32
    %0 = arith.cmpi eq, %arg1, %c0_i32 : i32
    %1 = arith.extui %0 : i1 to i32
    %c0_i32_0 = arith.constant 0 : i32
    %2 = arith.cmpi ne, %1, %c0_i32_0 : i32
    scf.if %2 {
      %cst_44 = arith.constant 0.000000e+00 : f32
      %61 = vector.broadcast %cst_44 : f32 to vector<1x8x32xf32>
      %c0_45 = arith.constant 0 : index
      %c0_46 = arith.constant 0 : index
      %c0_47 = arith.constant 0 : index
      %62 = vector.load %arg14[%c0_45, %c0_46, %c0_47] : memref<1x8x32xf32, #tpu.memory_space<vmem>>, vector<1x8x32xf32>
      tpu.vector_store %arg14[%c0_45, %c0_46, %c0_47], %61 {strides = array<i32>} : memref<1x8x32xf32, #tpu.memory_space<vmem>>, vector<1x8x32xf32>,
    } else {
    }
    %c0 = arith.constant 0 : index
    %c0_1 = arith.constant 0 : index
    %c0_2 = arith.constant 0 : index
    %3 = vector.load %arg2[%c0, %c0_1, %c0_2] : memref<1x8x32xbf16, #tpu.memory_space<vmem>>, vector<1x8x32xbf16>
    %4 = vector.shape_cast %3 : vector<1x8x32xbf16> to vector<8x32xbf16>
    %c0_3 = arith.constant 0 : index
    %c0_4 = arith.constant 0 : index
    %c0_5 = arith.constant 0 : index
    %5 = vector.load %arg3[%c0_3, %c0_4, %c0_5] : memref<1x8x32xbf16, #tpu.memory_space<vmem>>, vector<1x8x32xbf16>
    %6 = vector.shape_cast %5 : vector<1x8x32xbf16> to vector<8x32xbf16>
    %c0_6 = arith.constant 0 : index
    %c0_7 = arith.constant 0 : index
    %c0_8 = arith.constant 0 : index
    %7 = vector.load %arg4[%c0_6, %c0_7, %c0_8] : memref<1x8x32xbf16, #tpu.memory_space<vmem>>, vector<1x8x32xbf16>
    %8 = vector.shape_cast %7 : vector<1x8x32xbf16> to vector<8x32xbf16>
    %c0_9 = arith.constant 0 : index
    %c0_10 = arith.constant 0 : index
    %c0_11 = arith.constant 0 : index
    %9 = vector.load %arg5[%c0_9, %c0_10, %c0_11] : memref<1x32x8xbf16, #tpu.memory_space<vmem>>, vector<1x32x8xbf16>
    %10 = vector.shape_cast %9 : vector<1x32x8xbf16> to vector<32x8xbf16>
    %cst = arith.constant dense<0.000000e+00> : vector<8x8xf32>
    %11 = tpu.matmul %4, %10, %cst {dimension_numbers = #tpu.dot_dimension_numbers<[1], [0], [0], [1], [0, 0, 1, 1], [], []>} : vector<8x32xbf16>, vector<32x8xbf16>, vector<8x8xf32> -> vector<8x8xf32>
    %c0_12 = arith.constant 0 : index
    %c0_13 = arith.constant 0 : index
    %c0_14 = arith.constant 0 : index
    %12 = vector.load %arg6[%c0_12, %c0_13, %c0_14] : memref<1x1x8xf32, #tpu.memory_space<vmem>>, vector<1x1x8xf32>
    %13 = vector.shape_cast %12 : vector<1x1x8xf32> to vector<1x8xf32>
    %14 = vector.broadcast %13 : vector<1x8xf32> to vector<8x8xf32>
    %15 = arith.addf %11, %14 : vector<8x8xf32>
    %16 = arith.truncf %15 : vector<8x8xf32> to vector<8x8xbf16>
    %17 = vector.shape_cast %16 : vector<8x8xbf16> to vector<1x8x8xbf16>
    %c0_15 = arith.constant 0 : index
    %c0_16 = arith.constant 0 : index
    %c0_17 = arith.constant 0 : index
    %18 = vector.load %arg7[%c0_15, %c0_16, %c0_17] : memref<1x32x8xbf16, #tpu.memory_space<vmem>>, vector<1x32x8xbf16>
    %19 = vector.shape_cast %18 : vector<1x32x8xbf16> to vector<32x8xbf16>
    %cst_18 = arith.constant dense<0.000000e+00> : vector<8x8xf32>
    %20 = tpu.matmul %6, %19, %cst_18 {dimension_numbers = #tpu.dot_dimension_numbers<[1], [0], [0], [1], [0, 0, 1, 1], [], []>} : vector<8x32xbf16>, vector<32x8xbf16>, vector<8x8xf32> -> vector<8x8xf32>
    %c0_19 = arith.constant 0 : index
    %c0_20 = arith.constant 0 : index
    %c0_21 = arith.constant 0 : index
    %21 = vector.load %arg8[%c0_19, %c0_20, %c0_21] : memref<1x1x8xf32, #tpu.memory_space<vmem>>, vector<1x1x8xf32>
    %22 = vector.shape_cast %21 : vector<1x1x8xf32> to vector<1x8xf32>
    %23 = vector.broadcast %22 : vector<1x8xf32> to vector<8x8xf32>
    %24 = arith.addf %20, %23 : vector<8x8xf32>
    %25 = arith.truncf %24 : vector<8x8xf32> to vector<8x8xbf16>
    %26 = vector.shape_cast %25 : vector<8x8xbf16> to vector<1x8x8xbf16>
    %c0_22 = arith.constant 0 : index
    %c0_23 = arith.constant 0 : index
    %c0_24 = arith.constant 0 : index
    %27 = vector.load %arg9[%c0_22, %c0_23, %c0_24] : memref<1x32x8xbf16, #tpu.memory_space<vmem>>, vector<1x32x8xbf16>
    %28 = vector.shape_cast %27 : vector<1x32x8xbf16> to vector<32x8xbf16>
    %cst_25 = arith.constant dense<0.000000e+00> : vector<8x8xf32>
    %29 = tpu.matmul %8, %28, %cst_25 {dimension_numbers = #tpu.dot_dimension_numbers<[1], [0], [0], [1], [0, 0, 1, 1], [], []>} : vector<8x32xbf16>, vector<32x8xbf16>, vector<8x8xf32> -> vector<8x8xf32>
    %c0_26 = arith.constant 0 : index
    %c0_27 = arith.constant 0 : index
    %c0_28 = arith.constant 0 : index
    %30 = vector.load %arg10[%c0_26, %c0_27, %c0_28] : memref<1x1x8xf32, #tpu.memory_space<vmem>>, vector<1x1x8xf32>
    %31 = vector.shape_cast %30 : vector<1x1x8xf32> to vector<1x8xf32>
    %32 = vector.broadcast %31 : vector<1x8xf32> to vector<8x8xf32>
    %33 = arith.addf %29, %32 : vector<8x8xf32>
    %34 = arith.truncf %33 : vector<8x8xf32> to vector<8x8xbf16>
    %35 = vector.shape_cast %34 : vector<8x8xbf16> to vector<1x8x8xbf16>
    "tpu.trace_start"() <{level = 10 : i32, message = "bqd,bkd->bqk"}> : () -> ()
    %cst_29 = arith.constant dense<0.000000e+00> : vector<1x8x8xf32>
    %36 = tpu.matmul %17, %26, %cst_29 {dimension_numbers = #tpu.dot_dimension_numbers<[2], [2], [1], [1], [0, 0, 0, 1, 1, 1], [0], [0]>} : vector<1x8x8xbf16>, vector<1x8x8xbf16>, vector<1x8x8xf32> -> vector<1x8x8xf32>
    "tpu.trace_stop"() : () -> ()
    %cst_30 = arith.constant dense<0xFF800000> : vector<1x8xf32>
    %37 = vector.multi_reduction <maximumf>, %36, %cst_30 [2] : vector<1x8x8xf32> to vector<1x8xf32>
    %38 = vector.shape_cast %37 : vector<1x8xf32> to vector<1x8x1xf32>
    %39 = vector.broadcast %38 : vector<1x8x1xf32> to vector<1x8x8xf32>
    %40 = arith.subf %36, %39 : vector<1x8x8xf32>
    %41 = math.exp %40 : vector<1x8x8xf32>
    %cst_31 = arith.constant dense<0.000000e+00> : vector<1x8xf32>
    %42 = vector.multi_reduction <add>, %41, %cst_31 [2] : vector<1x8x8xf32> to vector<1x8xf32>
    %43 = vector.shape_cast %42 : vector<1x8xf32> to vector<1x8x1xf32>
    %44 = arith.truncf %41 : vector<1x8x8xf32> to vector<1x8x8xbf16>
    "tpu.trace_start"() <{level = 10 : i32, message = "bqk,bkd->bqd"}> : () -> ()
    %cst_32 = arith.constant dense<0.000000e+00> : vector<1x8x8xf32>
    %45 = tpu.matmul %44, %35, %cst_32 {dimension_numbers = #tpu.dot_dimension_numbers<[2], [1], [1], [2], [0, 0, 0, 1, 1, 2], [0], [0]>} : vector<1x8x8xbf16>, vector<1x8x8xbf16>, vector<1x8x8xf32> -> vector<1x8x8xf32>
    "tpu.trace_stop"() : () -> ()
    %46 = tpu.reciprocal %43 {approx = true} : vector<1x8x1xf32> -> vector<1x8x1xf32>
    %47 = vector.broadcast %46 : vector<1x8x1xf32> to vector<1x8x8xf32>
    %48 = arith.mulf %45, %47 : vector<1x8x8xf32>
    %49 = arith.truncf %48 : vector<1x8x8xf32> to vector<1x8x8xbf16>
    %50 = vector.shape_cast %49 : vector<1x8x8xbf16> to vector<8x8xbf16>
    %c0_33 = arith.constant 0 : index
    %c0_34 = arith.constant 0 : index
    %c0_35 = arith.constant 0 : index
    %51 = vector.load %arg14[%c0_33, %c0_34, %c0_35] : memref<1x8x32xf32, #tpu.memory_space<vmem>>, vector<1x8x32xf32>
    %c0_36 = arith.constant 0 : index
    %c0_37 = arith.constant 0 : index
    %c0_38 = arith.constant 0 : index
    %52 = vector.load %arg11[%c0_36, %c0_37, %c0_38] : memref<1x8x32xbf16, #tpu.memory_space<vmem>>, vector<1x8x32xbf16>
    %53 = vector.shape_cast %52 : vector<1x8x32xbf16> to vector<8x32xbf16>
    %cst_39 = arith.constant dense<0.000000e+00> : vector<8x32xf32>
    %54 = tpu.matmul %50, %53, %cst_39 {dimension_numbers = #tpu.dot_dimension_numbers<[1], [0], [0], [1], [0, 0, 1, 1], [], []>} : vector<8x8xbf16>, vector<8x32xbf16>, vector<8x32xf32> -> vector<8x32xf32>
    %55 = vector.shape_cast %54 : vector<8x32xf32> to vector<1x8x32xf32>
    %56 = arith.addf %51, %55 : vector<1x8x32xf32>
    %c0_40 = arith.constant 0 : index
    %c0_41 = arith.constant 0 : index
    %c0_42 = arith.constant 0 : index
    %57 = vector.load %arg14[%c0_40, %c0_41, %c0_42] : memref<1x8x32xf32, #tpu.memory_space<vmem>>, vector<1x8x32xf32>
    tpu.vector_store %arg14[%c0_40, %c0_41, %c0_42], %56 {strides = array<i32>} : memref<1x8x32xf32, #tpu.memory_space<vmem>>, vector<1x8x32xf32>,
    %c3_i32 = arith.constant 3 : i32
    %58 = arith.cmpi eq, %arg1, %c3_i32 : i32
    %59 = arith.extui %58 : i1 to i32
    %c0_i32_43 = arith.constant 0 : i32
    %60 = arith.cmpi ne, %59, %c0_i32_43 : i32
    scf.if %60 {
      %c0_44 = arith.constant 0 : index
      %c0_45 = arith.constant 0 : index
      %c0_46 = arith.constant 0 : index
      %61 = vector.load %arg14[%c0_44, %c0_45, %c0_46] : memref<1x8x32xf32, #tpu.memory_space<vmem>>, vector<1x8x32xf32>
      %c0_47 = arith.constant 0 : index
      %c0_48 = arith.constant 0 : index
      %62 = vector.load %arg12[%c0_47, %c0_48] : memref<1x32xf32, #tpu.memory_space<vmem>>, vector<1x32xf32>
      %63 = vector.shape_cast %62 : vector<1x32xf32> to vector<1x1x32xf32>
      %64 = vector.broadcast %63 : vector<1x1x32xf32> to vector<1x8x32xf32>
      %65 = arith.addf %61, %64 : vector<1x8x32xf32>
      %c0_49 = arith.constant 0 : index
      %c0_50 = arith.constant 0 : index
      %c0_51 = arith.constant 0 : index
      %66 = vector.load %arg13[%c0_49, %c0_50, %c0_51] : memref<1x8x32xf32, #tpu.memory_space<vmem>>, vector<1x8x32xf32>
      tpu.vector_store %arg13[%c0_49, %c0_50, %c0_51], %65 {strides = array<i32>} : memref<1x8x32xf32, #tpu.memory_space<vmem>>, vector<1x8x32xf32>,
    } else {
    }
    return
  }
  func.func @transform_0(%arg0: i32, %arg1: i32) -> (i32, i32, i32) {
    %c0_i32 = arith.constant 0 : i32
    %c0_i32_0 = arith.constant 0 : i32
    %c0_i32_1 = arith.constant 0 : i32
    return %arg0, %c0_i32, %c0_i32_0 : i32, i32, i32
  }
  func.func @transform_1(%arg0: i32, %arg1: i32) -> (i32, i32, i32) {
    %c0_i32 = arith.constant 0 : i32
    %c0_i32_0 = arith.constant 0 : i32
    %c0_i32_1 = arith.constant 0 : i32
    return %arg0, %c0_i32, %c0_i32_0 : i32, i32, i32
  }
  func.func @transform_2(%arg0: i32, %arg1: i32) -> (i32, i32, i32) {
    %c0_i32 = arith.constant 0 : i32
    %c0_i32_0 = arith.constant 0 : i32
    %c0_i32_1 = arith.constant 0 : i32
    return %arg0, %c0_i32, %c0_i32_0 : i32, i32, i32
  }
  func.func @transform_3(%arg0: i32, %arg1: i32) -> (i32, i32, i32) {
    %c0_i32 = arith.constant 0 : i32
    %c0_i32_0 = arith.constant 0 : i32
    %c0_i32_1 = arith.constant 0 : i32
    return %arg1, %c0_i32, %c0_i32_0 : i32, i32, i32
  }
  func.func @transform_4(%arg0: i32, %arg1: i32) -> (i32, i32, i32) {
    %c0_i32 = arith.constant 0 : i32
    %c0_i32_0 = arith.constant 0 : i32
    %c0_i32_1 = arith.constant 0 : i32
    return %arg1, %c0_i32, %c0_i32_0 : i32, i32, i32
  }
  func.func @transform_5(%arg0: i32, %arg1: i32) -> (i32, i32, i32) {
    %c0_i32 = arith.constant 0 : i32
    %c0_i32_0 = arith.constant 0 : i32
    %c0_i32_1 = arith.constant 0 : i32
    return %arg1, %c0_i32, %c0_i32_0 : i32, i32, i32
  }
  func.func @transform_6(%arg0: i32, %arg1: i32) -> (i32, i32, i32) {
    %c0_i32 = arith.constant 0 : i32
    %c0_i32_0 = arith.constant 0 : i32
    %c0_i32_1 = arith.constant 0 : i32
    return %arg1, %c0_i32, %c0_i32_0 : i32, i32, i32
  }
  func.func @transform_7(%arg0: i32, %arg1: i32) -> (i32, i32, i32) {
    %c0_i32 = arith.constant 0 : i32
    %c0_i32_0 = arith.constant 0 : i32
    %c0_i32_1 = arith.constant 0 : i32
    return %arg1, %c0_i32, %c0_i32_0 : i32, i32, i32
  }
  func.func @transform_8(%arg0: i32, %arg1: i32) -> (i32, i32, i32) {
    %c0_i32 = arith.constant 0 : i32
    %c0_i32_0 = arith.constant 0 : i32
    %c0_i32_1 = arith.constant 0 : i32
    return %arg1, %c0_i32, %c0_i32_0 : i32, i32, i32
  }
  func.func @transform_9(%arg0: i32, %arg1: i32) -> (i32, i32, i32) {
    %c0_i32 = arith.constant 0 : i32
    %c0_i32_0 = arith.constant 0 : i32
    %c0_i32_1 = arith.constant 0 : i32
    return %arg1, %c0_i32, %c0_i32_0 : i32, i32, i32
  }
  func.func @transform_10(%arg0: i32, %arg1: i32) -> (i32, i32) {
    %c0_i32 = arith.constant 0 : i32
    %c0_i32_0 = arith.constant 0 : i32
    %c0_i32_1 = arith.constant 0 : i32
    return %c0_i32, %c0_i32_0 : i32, i32
  }
  func.func @transform_11(%arg0: i32, %arg1: i32) -> (i32, i32, i32) {
    %c0_i32 = arith.constant 0 : i32
    %c0_i32_0 = arith.constant 0 : i32
    %c0_i32_1 = arith.constant 0 : i32
    return %arg0, %c0_i32, %c0_i32_0 : i32, i32, i32
  }
}

</mosaic_0001>

<bundles_post_ra>
// kernel: tpu_custom_call.1
= control target key start
LH: loop header
LB: loop body
LE: loop exit
PB: predicated region body
PF: predicated region fallthrough
CT: control target
= control target key end

     0   :  { %s1694_s0 = inlined_call_operand.vmem [shape: bf16[2,8,32], index: 0, kind: input, shape index: {}]   ;;  %s1695_s1 = inlined_call_operand.vmem [shape: bf16[2,8,32], index: 1, kind: input, shape index: {}]   ;;  %s1696_s2 = inlined_call_operand.vmem [shape: bf16[2,8,32], index: 2, kind: input, shape index: {}]   ;;  %s1697_s3 = inlined_call_operand.vmem [shape: bf16[4,32,8], index: 3, kind: input, shape index: {}]   ;;  %s1698_s4 = inlined_call_operand.vmem [shape: f32[4,1,8], index: 4, kind: input, shape index: {}]   ;;  %s1699_s5 = inlined_call_operand.vmem [shape: bf16[4,32,8], index: 5, kind: input, shape index: {}]   ;;  %s1700_s6 = inlined_call_operand.vmem [shape: f32[4,1,8], index: 6, kind: input, shape index: {}]   ;;  %s1701_s7 = inlined_call_operand.vmem [shape: bf16[4,32,8], index: 7, kind: input, shape index: {}]   ;;  %s1702_s8 = inlined_call_operand.vmem [shape: f32[4,1,8], index: 8, kind: input, shape index: {}]   ;;  %s1703_s9 = inlined_call_operand.vmem [shape: bf16[4,8,32], index: 9, kind: input, shape index: {}]   ;;  %s1704_s10 = inlined_call_operand.vmem [shape: f32[1,32], index: 10, kind: input, shape index: {}]   ;;  %s1705_s11 = inlined_call_operand.hbm [shape: f32[2,8,32], index: 11, kind: output, shape index: {}]  }
   0x1   :  { %1720 = sst [smem:[#allocation18_spill]] %s1697_s3 }
   0x2   :  { %1721 = sst [smem:[#allocation19_spill]] %s1704_s10 }
   0x3   :  { %1722 = sst [smem:[#allocation20_spill]] %s1705_s11 }
   0x4   :  { %16 = vsyncpa [#allocation4], 0 }
   0x5   :  { %18 = vsyncpa [#allocation4 + $0x1], 0  ;;  %s1455_s17 = smov 0   ;;  %s1457_s18 = smov 0  }
   0x6   :  { %s1459_s19 = smov 0   ;;  %s1461_s20 = smov 0  }
   0x7   :  { %s1463_s21 = smov 0   ;;  %s1465_s22 = smov 0  }
   0x8   :  { %s1467_s23 = smov 0   ;;  %s1469_s24 = smov 0  }
   0x9 LB: > { %1723 = sst [smem:[#allocation6_spill]] %s1361_s17  ;;  %s1113_s25 = sadd.s32 4294967295, %s1389_s24   ;;  %s1389_s24 = sphi %s1469_s24, %s24_s24   ;;  %s1385_s23 = sphi %s1467_s23, %s1758_s23   ;;  %s1381_s22 = sphi %s1465_s22, %s1757_s22   ;;  %s1377_s21 = sphi %s1463_s21, %s1756_s21   ;;  %s1373_s20 = sphi %s1461_s20, %s1755_s20   ;;  %s1369_s19 = sphi %s1459_s19, %s1754_s19   ;;  %s1365_s18 = sphi %s1457_s18, %s1753_s18   ;;  %s1361_s17 = sphi %s1455_s17, %s1752_s17  }
   0xa   : > { %1724 = sst [smem:[#allocation7_spill]] %s1365_s18  ;;  %s1114_s26 = sadd.s32 4294967294, %s1389_s24  }
   0xb   : > { %1725 = sst [smem:[#allocation8_spill]] %s1369_s19  ;;  %s33_s27 = sadd.s32 1, %s1381_s22 }
   0xc   : > { %1726 = sst [smem:[#allocation9_spill]] %s1377_s21  ;;  %p34_p0 = scmp.ge.s32.totalorder %s33_s27, 4 }
   0xd   : > { %1727 = sst [smem:[#allocation10_spill]] %s1381_s22  ;;  %s36_s28 = sadd.s32 1, %s1385_s23 }
   0xe   : > { %1728 = sst [smem:[#allocation11_spill]] %s1385_s23  ;;  %p334_p1 = scmp.ne.s32.totalorder %s1369_s19, %s1365_s18 }
   0xf   : > { %1729 = sst [smem:[#allocation12_spill]] %s1389_s24  ;;  %p335_p2 = scmp.eq.s32.totalorder %s1113_s25, 7 }
  0x10   : > { %s1760_s27 = smov (%p34_p0, %s33_s27), 0  ;;  %s1762_s28 = smov (!%p34_p0, %s36_s28), %s1385_s23 }
  0x11   : > { %1730 = sst [smem:[#allocation13_spill]] %s1760_s27  ;;  %p1504_p3 = por %p335_p2, %p334_p1 }
  0x12   : > { %p340_p4 = scmp.ne.s32.totalorder %s1365_s18, %s1361_s17  ;;  %p38_p5 = scmp.ge.s32.totalorder %s1762_s28, 2 }
  0x13   : > { %s1731_s29 = scalar_select %p1504_p3, 1, 0 }
  0x14   : > { %p341_p6 = scmp.eq.s32.totalorder %s1114_s26, 7  ;;  %p1117_p7 = scmp.ge.s32.totalorder %s1389_s24, 1 }
  0x15   : > { %1732 = sst [smem:[#allocation14_spill]] %s1731_s29  ;;  %p432_p8 = scmp.lt.s32.totalorder %s1389_s24, 9 }
  0x16   : > { %s1764_s28 = smov (%p38_p5, %s1762_s28), 0  ;;  %p1514_p9 = por %p341_p6, %p340_p4 }
  0x17   : > { %1733 = sst [smem:[#allocation15_spill]] %s1764_s28  ;;  %p433_p10 = pnand %p1117_p7, %p432_p8 }
  0x18   : > { %s1734_s30 = scalar_select %p1514_p9, 1, 0 }
  0x19   : > { %s321_s12 = ssub.s32 %s1385_s23, %s1764_s28  ;;  %s324_s13 = sadd.s32 1, %s1369_s19 }
  0x1a   : > { %1735 = sst [smem:[#allocation16_spill]] %s1734_s30  ;;  %p322_p11 = scmp.eq.s32.totalorder %s321_s12, 0 }
  0x1b   : > { %436 = sbr.rel (%p433_p10) target bundleno = 1119 (0x45f), region = 64  ;;  %s1707_s15 = sand.u32 (!%p433_p10), 1, %s1365_s18  }
  0x1c   : > { %s1522_s14 = scalar_select %p322_p11, %s1369_s19, %s324_s13  }
  0x1d   : > { %p507_p12 = scmp.lt.s32.totalorder (!%p433_p10), %s1377_s21, 1  ;;  %s1528_s16 = sshll.u32 (!%p433_p10), %s1707_s15, 3 }
  0x1e   : > { %1736 = sst [smem:[#allocation17_spill]] %s1522_s14  ;;  %p519_p13 = scmp.lt.s32.totalorder (!%p433_p10), %s1373_s20, 3 }
  0x1f   : > { %s1737_s3 = sld [smem:[#allocation18_spill]] (!%p433_p10)  ;;  %p1129_p0 = scmp.ne.s32.totalorder (!%p433_p10), %s1373_s20, 0 }
  0x22   : > { %s508_s25 = scalar_select %p507_p12, %s1377_s21, 1 }
  0x23   : > { %s1533_s26 = scalar_select %p519_p13, %s1373_s20, 3 }
  0x24   : > { %s1535_s12 = sshll.u32 %s508_s25, 2  ;;  %s506_s21 = scalar_lea.vmem [#allocation3], %s1528_s16  ;;  %vm552_vm0 = vcmask (!%p1129_p0), 261120   ;;  %v1391_v0 = vmov (!%p1129_p0), 0.0  }
  0x25   : > { %s1151_s17 = sshll.u32 %s1533_s26, 4  ;;  %s534_s27 = scalar_lea.vmem %s1700_s6, %s1533_s26  ;;  %553 = vst.msk [vmem:[#allocation2] sm:$0xff] (!%p1129_p0), %vm552_vm0, %v1391_v0 }
  0x26   : > { %s523_s25 = scalar_lea.vmem %s1737_s3, %s1151_s17  ;;  %s531_s15 = scalar_lea.vmem %s1699_s5, %s1151_s17 }
  0x27   : > { %s1567_s14 = scalar_lea.vmem %s1701_s7, %s1151_s17  ;;  %s542_s24 = scalar_lea.vmem %s1702_s8, %s1533_s26 }
  0x28   : > { %s1128_s3 = sshll.u32 %s1533_s26, 2  ;;  %551 = sbr.rel (%p1129_p0) target bundleno = 47 (0x2f), region = 68 }
  0x29   : > { %s1577_s28 = scalar_lea.vmem %s1703_s9, %s1128_s3 }
  0x2f PF: > { %v1285_v1 = vld [vmem:[%s531_s15] sm:$0xff]   ;;  %v1392_v2 = vmov 0.0   ;;  %v1286_v3 = vld [vmem:[%s531_s15 + $0x8] sm:$0xff]   ;;  %vm1393_vm1 = vmmov 0   ;;  %s1738_s17 = scalar_lea.vmem %s1695_s1, %s1535_s12  ;;  %vm580_vm2 = vcmask 261120   ;;  %s1739_s15 = scalar_lea.vmem %s1694_s0, %s1535_s12  ;;  %vm759_vm3 = vcmask 64512  }
  0x30   : > { %1177 = vmatprep.subr.bf16.mxu1 %v1392_v2  ;;  %1169 = vmatprep.subr.bf16.mxu0 %v1392_v2  ;;  %v1287_v4 = vld [vmem:[%s523_s25] sm:$0xff]   ;;  %v1288_v5 = vld [vmem:[%s523_s25 + $0x8] sm:$0xff]   ;;  %s1740_s23 = scalar_lea.vmem %s1696_s2, %s1535_s12  ;;  %s1741_s12 = scalar_lea.vmem %s1698_s4, %s1533_s26  ;;  %vm819_vm4 = vcmask 1043456  }
  0x31   : > { %1178 = vmatpush3.bf16.msra.mxu1 %v1285_v1  ;;  %1181 = vmatprep.mubr.msk.bf16.mxu1 %vm1393_vm1, %v1392_v2  ;;  %v555_v6 = vld [vmem:[%s1738_s17] sm:$0xf]  ;;  %v1290_v9 = vld [vmem:[%s1567_s14 + $0x8] sm:$0xff]   ;;  %p1145_p1 = scmp.ne.s32.totalorder %s1373_s20, 3 }
  0x32   : > { %1179 = vmatprep.subr.bf16.mxu1 %v1392_v2  ;;  %1173 = vmatprep.mubr.msk.bf16.mxu0 %vm1393_vm1, %v1392_v2  ;;  %v554_v7 = vld [vmem:[%s1739_s15] sm:$0xf] }
  0x33   : > { %1170 = vmatpush3.bf16.msra.mxu0 %v1287_v4  ;;  %v1289_v8 = vld [vmem:[%s1567_s14] sm:$0xff]  }
  0x34   : > { %1171 = vmatprep.subr.bf16.mxu0 %v1392_v2  ;;  %v556_v10 = vld [vmem:[%s1740_s23] sm:$0xf] }
  0x35   : > { %1180 = vmatpush3.bf16.msra.mxu1 %v1286_v3  ;;  %v1134_v11 = vld [vmem:[%s534_s27] ss:$0 sm:$0xff] }
  0x36   : > { %1193 = vmatprep.subr.bf16.mxu1 %v1392_v2  ;;  %v1130_v16 = vld [vmem:[%s1741_s12] ss:$0 sm:$0xff] }
  0x37   : > { %1172 = vmatpush3.bf16.msra.mxu0 %v1288_v5  ;;  %v1138_v31 = vld [vmem:[%s542_s24] ss:$0 sm:$0xff]  ;;  %s1742_s24 = sld [smem:[#allocation19_spill]] (!%p1145_p1) }
  0x38   : > { %1182 = vmatmul.mubr.msk.bf16.vlgmr.msra.gmra.mrb[0].mxu1 %vm580_vm2, %v555_v6  ;;  %1185 = vmatprep.subr.bf16.mxu0 %v1392_v2  ;;  %v867_v45 = vld [vmem:[%s1577_s28] sm:$0xf] }
  0x39   : > { %1195 = vmatprep.mubr.msk.bf16.mxu1 %vm1393_vm1, %v1392_v2  ;;  %v872_v46 = vsel %vm819_vm4, %v867_v45, 0  ;;  %v866_v55 = vld [vmem:[#allocation2] sm:$0xff] }
  0x3a   : > { %1174 = vmatmul.mubr.msk.bf16.vlgmr.msra.gmra.mrb[0].mxu0 %vm580_vm2, %v554_v7 }
  0x3b   : > { %1189 = vmatprep.mubr.msk.bf16.mxu0 %vm1393_vm1, %v1392_v2  ;;  %1186 = vmatpush3.bf16.msra.mxu0 %v1289_v8 }
  0x3c   : > { %1187 = vmatprep.subr.bf16.mxu0 %v1392_v2 }
  0x3d   : > { %v1146_v62 = vld [vmem:[%s1742_s24] ss:$0 sm:$0xff] (!%p1145_p1) }
  0x3f   : > { %1188 = vmatpush3.bf16.msra.mxu0 %v1290_v9 }
  0x40   : > { %1199 = vmatprep.subr.bf16.mxu0 %v1392_v2 }
  0x42   : > { %1190 = vmatmul.mubr.msk.bf16.vlgmr.msra.gmra.mrb[4].mxu0 %vm580_vm2, %v556_v10 }
  0x43   : > { %1201 = vmatprep.mubr.msk.bf16.mxu0 %vm1393_vm1, %v1392_v2 }
 0x10b   : > { %v685_v12 = vpop.f32.mrb[0].mxu1 }
 0x10c   : > { %v686_v13 = vadd.f32 %v1134_v11, %v685_v12  ;;  %v1183_v14 = vpop.f32.mrb[1].mxu1 }
 0x10d   : > { %v688_v15 = vpop.f32.mrb[2].mxu1  ;;  %v618_v17 = vpop.f32.mrb[0].mxu0 }
 0x10e   : > { %v691_v18 = vpack.c.bf16 %v686_v13, %v686_v13  ;;  %v1184_v19 = vpop.f32.mrb[3].mxu1  ;;  %v1175_v20 = vpop.f32.mrb[1].mxu0  ;;  %v619_v23 = vadd.f32 %v1130_v16, %v618_v17 }
 0x10f   : > { %v621_v21 = vpop.f32.mrb[2].mxu0 }
 0x110   : > { %v764_v22 = vsel %vm759_vm3, %v691_v18, 0  ;;  %v1176_v24 = vpop.f32.mrb[3].mxu0  ;;  %v624_v25 = vpack.c.bf16 %v619_v23, %v619_v23 }
 0x111   : > { %1194 = vmatpush3.bf16.xpose.msra.mxu1 %v764_v22 }
 0x112   : > { %1205 = vmatprep.subr.bf16.mxu1 %v1392_v2 }
 0x115   : > { %v752_v32 = vpop.f32.mrb[4].mxu0 }
 0x116   : > { %v753_v33 = vadd.f32 %v1138_v31, %v752_v32  ;;  %v1191_v34 = vpop.f32.mrb[5].mxu0 }
 0x117   : > { %v755_v35 = vpop.f32.mrb[6].mxu0 }
 0x118   : > { %1196 = vmatmul.mubr.msk.bf16.vlgmr.msra.gmra.mrb[4].mxu1 %vm759_vm3, %v624_v25  ;;  %v758_v36 = vpack.c.bf16 %v753_v33, %v753_v33  ;;  %v1192_v37 = vpop.f32.mrb[7].mxu0 }
 0x119   : > { %1207 = vmatprep.mubr.msk.bf16.mxu1 %vm1393_vm1, %v1392_v2  ;;  %1206 = vmatpush3.bf16.msra.mxu1 %v872_v46 }
 0x11a   : > { %v821_v38 = vsel %vm819_vm4, %v758_v36, 0 }
 0x11b   : > { %1200 = vmatpush3.bf16.msra.mxu0 %v821_v38 }
 0x1eb   : > { %v800_v26 = vpop.f32.mrb[4].mxu1 }
 0x1ec   : > { %v1197_v27 = vpop.f32.mrb[5].mxu1  ;;  %v806_v28 = vsel %vm759_vm3, %v800_v26, -inf }
 0x1ed   : > { %807 = vmax.xlane.f32.xlu0 %v806_v28  ;;  %v803_v29 = vpop.f32.mrb[6].mxu1 }
 0x1ee   : > { %v1198_v30 = vpop.f32.mrb[7].mxu1 }
 0x27a   : > { %v808_v39 = vpop.xlane.xlu0 %807 }
 0x27b   : > { %v809_v40 = vsub.f32 %v800_v26, %v808_v39 }
 0x27d   : > { %v810_v41 = vmul.f32 1.442695, %v809_v40 }
 0x27f   : > { %1291 = vpow2.f32 %v810_v41 }
 0x289   : > { %v1292_v42 = vpop.eup %1291 }
 0x28a   : > { %v812_v43 = vsel %vm759_vm3, %v1292_v42, 0.0  ;;  %v815_v44 = vpack.c.bf16 %v1292_v42, %v1292_v42 }
 0x28b   : > { %813 = vadd.xlane.f32.xlu0 %v812_v43 }
 0x28c   : > { %1202 = vmatmul.mubr.msk.bf16.vlgmr.msra.gmra.mrb[8].mxu0 %vm759_vm3, %v815_v44 }
 0x318   : > { %v814_v47 = vpop.xlane.xlu0 %813 }
 0x319   : > { %1293 = vrcp.f32 %v814_v47 }
 0x323   : > { %v1294_v48 = vpop.eup %1293 }
 0x35f   : > { %v857_v49 = vpop.f32.mrb[8].mxu0 }
 0x360   : > { %v864_v50 = vmul.f32 %v1294_v48, %v857_v49  ;;  %v1203_v51 = vpop.f32.mrb[9].mxu0 }
 0x361   : > { %v860_v52 = vpop.f32.mrb[10].mxu0 }
 0x362   : > { %v865_v53 = vpack.c.bf16 %v864_v50, %v864_v50  ;;  %v1204_v54 = vpop.f32.mrb[11].mxu0 }
 0x364   : > { %1208 = vmatmul.mubr.msk.bf16.vlgmr.msra.gmra.mrb[8].mxu1 %vm759_vm3, %v865_v53 }
 0x434   : > { %919 = sbr.rel (%p1145_p1) target bundleno = 1093 (0x445), region = 72 }
 0x437   : > { %v908_v56 = vpop.f32.mrb[8].mxu1 }
 0x438   : > { %v914_v57 = vadd.f32 %v908_v56, %v866_v55  ;;  %v1209_v58 = vpop.f32.mrb[9].mxu1 }
 0x439   : > { %v911_v59 = vpop.f32.mrb[10].mxu1 }
 0x43a   : > { %915 = vst.msk [vmem:[#allocation2] sm:$0xff] %vm580_vm2, %v914_v57  ;;  %v1210_v60 = vpop.f32.mrb[11].mxu1 }
 0x441   : > { %v920_v61 = vld [vmem:[#allocation2] sm:$0xff] }
 0x442   : > { %v928_v63 = vadd.f32 %v1146_v62, %v920_v61 }
 0x444   : > { %929 = vst.msk [vmem:[%s506_s21] sm:$0xff] %vm580_vm2, %v928_v63 }
 0x445 PF: > { %s1743_s3 = sld [smem:[#allocation9_spill]]  ;;  %s1746_s20 = sld [smem:[#allocation20_spill]] }
 0x446   : > { %s1744_s10 = sld [smem:[#allocation7_spill]]  ;;  %s944_s23 = sshll.u32 %s506_s21, 4  ;;  %s945_s23 = int_to_ptr.vmem [resolvable:$true] %s944_s23 }
 0x447   : > { %s1295_s14 = scalar_lea.vmem %s945_s23, 128  ;;  %s1394_s18 = smov [#allocation3]  }
 0x448   : > { %p1296_p2 = scmp.ne.s32.totalorder %s945_s23, %s1295_s14  ;;  %s1299_s12 = sshll.u32 %s1394_s18, 4  ;;  %s1300_s12 = int_to_ptr.vmem [resolvable:$false] %s1299_s12 }
 0x449   : > { %s1301_s27 = scalar_lea.vmem %s1300_s12, 256  ;;  %p1302_p6 = scmp.lt.s32.totalorder %s945_s23, %s1300_s12 }
 0x44a   : > { %p1297_p4 = pnand %p1296_p2, %p1504_p3  ;;  %p1303_p7 = scmp.lt.s32.totalorder %s1301_s27, %s1295_s14 }
 0x44b   : > { %s1148_s22 = sshll.u32 %s1743_s3, 7  ;;  %s1747_s25 = smov %s1746_s20 }
 0x44c   : > { %s1643_s13 = scalar_lea.hbm %s1746_s20, %s1148_s22  ;;  %s1748_s19 = sand.u32 1, %s1744_s10  }
 0x44d   : > { %s931_s11 = scalar_lea.sflag [#allocation4], %s1748_s19  ;;  %p1298_p5 = pneg %p1297_p4 }
 0x44e   : > { %p1304_p8 = por %p1303_p7, %p1302_p6 }
 0x450   : > { %p1305_p10 = pnand %p1304_p8, %p1298_p5 }
 0x452   : > { %1308 = shalt.err (!%p1305_p10)
}
 0x453   : > { %s1309_s16 = scalar_lea.hbm %s1643_s13, 128  ;;  %s1313_s26 = scalar_lea.hbm %s1747_s25, 256 }
 0x454   : > { %p1310_p11 = scmp.ne.s32.totalorder %s1643_s13, %s1309_s16  ;;  %p1314_p0 = scmp.lt.u32.totalorder %s1643_s13, %s1747_s25 }
 0x455   : > { %p1315_p1 = scmp.lt.u32.totalorder %s1313_s26, %s1309_s16  ;;  %p1317_p4 = scmp.lt.u32.totalorder %s1309_s16, %s1643_s13 }
 0x456   : > { %p1311_p12 = pnand %p1310_p11, %p1504_p3 }
 0x457   : > { %p1316_p2 = por %p1315_p1, %p1314_p0 }
 0x458   : > { %p1312_p13 = pneg %p1311_p12 }
 0x459   : > { %p1318_p5 = por %p1317_p4, %p1316_p2 }
 0x45b   : > { %p1319_p6 = pnand %p1318_p5, %p1312_p13 }
 0x45d   : > { %1322 = shalt.err (!%p1319_p6)
}
 0x45e   : > { %1211 = dma.vmem_to_hbm [thread:$0]  (%p1504_p3), %s945_s23, 128, %s1643_s13, %s931_s11  }
 0x45f PF: > { %s1749_s3 = sld [smem:[#allocation12_spill]]  ;;  %s1750_s10 = sld [smem:[#allocation6_spill]] }
 0x465   : > { %p1217_p7 = scmp.ge.s32.totalorder %s1749_s3, 2  ;;  %s956_s30 = sand.u32 1, %s1750_s10  }
 0x466   : > { %s957_s15 = scalar_lea.sflag [#allocation4], %s956_s30 }
 0x467   : > { %p1214_p8 = pnand %p1217_p7, %p1514_p9 }
 0x469   : > { %1356 = dma.done.wait (!%p1214_p8), %s957_s15, 128  }
 0x46a   : > { %1358 = vsyncadd (!%p1214_p8), %s957_s15, 4294967168  ;;  %s24_s24 = sadd.s32 1, %s1749_s3   ;;  %s1752_s17 = sld [smem:[#allocation7_spill]] }
 0x46b   : > { %p21_p10 = scmp.ge.s32.totalorder %s24_s24, 10   ;;  %s1753_s18 = sld [smem:[#allocation8_spill]] }
 0x46c   : > { %s1754_s19 = sld [smem:[#allocation17_spill]]  ;;  %s1755_s20 = sld [smem:[#allocation10_spill]] }
 0x46d   : > { %s1756_s21 = sld [smem:[#allocation11_spill]]  ;;  %s1757_s22 = sld [smem:[#allocation13_spill]] }
 0x46e   : > { %s1758_s23 = sld [smem:[#allocation15_spill]]  ;;  %23 = sbr.rel (!%p21_p10) target bundleno = 9 (0x9), region = 134 }
 0x475   :  { %962 = vsyncpa [#allocation4], 1 }
 0x476   :  { %964 = vsyncpa [#allocation4 + $0x1], 1 }

</bundles_post_ra>
